<compile_context>
chip_gen: v7x
topology: tpu7x:2x2x1
jax: 0.10.0
libtpu: 0.0.40
codegen_flags: <defaults>
</compile_context>

<pallas_src>
import math
import numpy as np

import jax
import jax.numpy as jnp
from jax.experimental import pallas as pl
from jax.experimental.pallas import tpu as pltpu


def _round_up(n, m):
    return ((n + m - 1) // m) * m


# ----------------------------------------------------------------------------
# Kernel: one batch tile per grid step.
#   x_ref      : (TB, in_p)      streamed
#   basesT_ref : (in_p, M_p)     resident
#   lambT_ref  : (M_p, out_p)    resident
#   bias_ref   : (1, out_p)      resident
#   o_ref      : (TB, out_p)     streamed
# ----------------------------------------------------------------------------
def _fourier_linear_kernel(x_ref, basesT_ref, lambT_ref, bias_ref, o_ref):
    # tmp = x @ bases^T  -> (TB, M_p), MXU with f32 accumulation.
    tmp = jnp.dot(x_ref[...], basesT_ref[...],
                  preferred_element_type=jnp.float32)
    # out = tmp @ lamb^T -> (TB, out_p)
    out = jnp.dot(tmp, lambT_ref[...],
                  preferred_element_type=jnp.float32)
    o_ref[...] = (out + bias_ref[...]).astype(o_ref.dtype)


def fourier_reparam_linear(x, lamb, bases, bias, *, block_b=512):
    """x: (B, in); lamb: (out, M); bases: (M, in); bias: (out, 1)."""
    B, in_f = x.shape
    out_f, M = lamb.shape
    assert bases.shape == (M, in_f)
    assert bias.shape == (out_f, 1)

    # --- lane-dense / tile-aligned padded sizes -----------------------------
    in_p = _round_up(in_f, 128)
    M_p = _round_up(M, 128)
    out_p = _round_up(out_f, 128)
    TB = min(block_b, _round_up(B, 8))     # batch tile (sublane multiple)
    B_p = _round_up(B, TB)
    nb = B_p // TB

    # Host-side (XLA) layout prep: transposes + zero padding are free-ish and
    # keep the kernel free of XLU transposes and masked stores.
    x_p = jnp.pad(x, ((0, B_p - B), (0, in_p - in_f)))
    basesT = jnp.pad(bases.T, ((0, in_p - in_f), (0, M_p - M)))      # (in_p, M_p)
    lambT = jnp.pad(lamb.T, ((0, M_p - M), (0, out_p - out_f)))      # (M_p, out_p)
    bias_row = jnp.pad(bias.T, ((0, 0), (0, out_p - out_f)))         # (1, out_p)

    # --- cost / VMEM bookkeeping --------------------------------------------
    flops = 2 * B_p * M_p * (in_p + out_p)
    bytes_accessed = 4 * (B_p * in_p + in_p * M_p + M_p * out_p
                          + out_p + B_p * out_p)
    # double-buffered x/out tiles + resident params + slack
    vmem_needed = 4 * (2 * TB * (in_p + out_p) + in_p * M_p
                       + M_p * out_p + out_p) + (1 << 20)
    vmem_limit = int(min(max(vmem_needed, 16 << 20), 64 << 20))

    out_padded = pl.pallas_call(
        _fourier_linear_kernel,
        out_shape=jax.ShapeDtypeStruct((B_p, out_p), x.dtype),
        grid_spec=pltpu.PrefetchScalarGridSpec(
            num_scalar_prefetch=0,
            grid=(nb,),
            in_specs=[
                pl.BlockSpec((TB, in_p), lambda i: (i, 0)),      # x: streamed
                pl.BlockSpec((in_p, M_p), lambda i: (0, 0)),     # bases^T: resident
                pl.BlockSpec((M_p, out_p), lambda i: (0, 0)),    # lamb^T: resident
                pl.BlockSpec((1, out_p), lambda i: (0, 0)),      # bias row: resident
            ],
            out_specs=pl.BlockSpec((TB, out_p), lambda i: (i, 0)),
        ),
        compiler_params=pltpu.CompilerParams(
            dimension_semantics=("parallel",),    # shard batch tiles across TCs (v7x)
            vmem_limit_bytes=vmem_limit,
        ),
        cost_estimate=pl.CostEstimate(
            flops=flops, transcendentals=0, bytes_accessed=bytes_accessed),
    )(x_p, basesT, lambT, bias_row)

    return out_padded[:B, :out_f]


# ----------------------------------------------------------------------------
# Deterministic parameter construction (mirrors the PyTorch __init__).
# ----------------------------------------------------------------------------
def init_bases(in_features, high_freq_num, low_freq_num, phi_num, alpha):
    phi_set = np.array([2 * math.pi * i / phi_num for i in range(phi_num)])
    high_freq = np.array([i + 1 for i in range(high_freq_num)], dtype=np.float64)
    low_freq = np.array([(i + 1) / low_freq_num for i in range(low_freq_num)],
                        dtype=np.float64)
    if len(low_freq) != 0:
        T_max = 2 * math.pi / low_freq[0]
    else:
        T_max = 2 * math.pi / min(high_freq)
    points = np.linspace(-T_max / 2, T_max / 2, in_features)

    rows = []
    for freq in low_freq:
        for phi in phi_set:
            rows.append(np.cos(freq * points + phi))
    for freq in high_freq:
        for phi in phi_set:
            rows.append(np.cos(freq * points + phi))
    bases = np.stack(rows, axis=0).astype(np.float32)  # (M, in_features)
    return alpha * bases


def init_lamb(key, out_features, bases):
    M = bases.shape[0]
    norms = np.linalg.norm(bases, ord=2, axis=1)            # (M,)
    bound = (np.sqrt(6.0 / M) / norms).astype(np.float32)   # (M,)
    u = jax.random.uniform(key, (out_features, M), dtype=jnp.float32,
                           minval=-1.0, maxval=1.0)
    return u * jnp.asarray(bound)[None, :]                  # (out, M)


# ----------------------------------------------------------------------------
if __name__ == "__main__":
    # Small shapes consistent with the module.
    in_features = 32
    out_features = 16
    high_freq_num = 2
    low_freq_num = 2
    phi_num = 4
    alpha = 0.1
    batch = 8
    M = (high_freq_num + low_freq_num) * phi_num  # 16

    key = jax.random.PRNGKey(0)
    k_x, k_lamb = jax.random.split(key)

    bases_np = init_bases(in_features, high_freq_num, low_freq_num, phi_num, alpha)
    bases = jnp.asarray(bases_np)                               # (M, in)
    lamb = init_lamb(k_lamb, out_features, bases_np)            # (out, M)
    bias = jnp.zeros((out_features, 1), dtype=jnp.float32)      # (out, 1)

    x = jax.random.normal(k_x, (batch, in_features), dtype=jnp.float32)

    out = fourier_reparam_linear(x, lamb, bases, bias)
    out = jax.block_until_ready(out)

    # Reference check in plain JAX (original formulation).
    weight_ref = lamb @ bases
    out_ref = x @ weight_ref.T + bias.T
    # Reassociated matmul order => last-ulp differences only.
    np.testing.assert_allclose(np.asarray(out), np.asarray(out_ref),
                               rtol=1e-4, atol=1e-5)

    print("KERNEL_OK")
</pallas_src>

<mosaic_0001>
module attributes {stable_mosaic.version = 11 : i64} {
  func.func @_fourier_linear_kernel(%arg0: i32, %arg1: memref<8x128xf32, #tpu.memory_space<vmem>>, %arg2: memref<128x128xf32, #tpu.memory_space<vmem>>, %arg3: memref<128x128xf32, #tpu.memory_space<vmem>>, %arg4: memref<1x128xf32, #tpu.memory_space<vmem>>, %arg5: memref<8x128xf32, #tpu.memory_space<vmem>>) attributes {dimension_semantics = [#tpu.dimension_semantics<parallel>], iteration_bounds = array<i64: 1>, scalar_prefetch = 0 : i64, scratch_operands = 0 : i64, tpu.core_type = #tpu.core_type<tc>, window_params = [{transform_indices = @transform_0, window_bounds = array<i64: 8, 128>}, {pipeline_mode = #tpu.pipeline_mode<synchronous>, transform_indices = @transform_1, window_bounds = array<i64: 128, 128>}, {pipeline_mode = #tpu.pipeline_mode<synchronous>, transform_indices = @transform_2, window_bounds = array<i64: 128, 128>}, {pipeline_mode = #tpu.pipeline_mode<synchronous>, transform_indices = @transform_3, window_bounds = array<i64: 1, 128>}, {transform_indices = @transform_4, window_bounds = array<i64: 8, 128>}]} {
    %c0 = arith.constant 0 : index
    %c0_0 = arith.constant 0 : index
    %0 = vector.load %arg1[%c0, %c0_0] : memref<8x128xf32, #tpu.memory_space<vmem>>, vector<8x128xf32>
    %c0_1 = arith.constant 0 : index
    %c0_2 = arith.constant 0 : index
    %1 = vector.load %arg2[%c0_1, %c0_2] : memref<128x128xf32, #tpu.memory_space<vmem>>, vector<128x128xf32>
    %cst = arith.constant dense<0.000000e+00> : vector<8x128xf32>
    %2 = tpu.matmul %0, %1, %cst {dimension_numbers = #tpu.dot_dimension_numbers<[1], [0], [0], [1], [0, 0, 1, 1], [], []>} : vector<8x128xf32>, vector<128x128xf32>, vector<8x128xf32> -> vector<8x128xf32>
    %c0_3 = arith.constant 0 : index
    %c0_4 = arith.constant 0 : index
    %3 = vector.load %arg3[%c0_3, %c0_4] : memref<128x128xf32, #tpu.memory_space<vmem>>, vector<128x128xf32>
    %cst_5 = arith.constant dense<0.000000e+00> : vector<8x128xf32>
    %4 = tpu.matmul %2, %3, %cst_5 {dimension_numbers = #tpu.dot_dimension_numbers<[1], [0], [0], [1], [0, 0, 1, 1], [], []>} : vector<8x128xf32>, vector<128x128xf32>, vector<8x128xf32> -> vector<8x128xf32>
    %c0_6 = arith.constant 0 : index
    %c0_7 = arith.constant 0 : index
    %5 = vector.load %arg4[%c0_6, %c0_7] : memref<1x128xf32, #tpu.memory_space<vmem>>, vector<1x128xf32>
    %6 = vector.broadcast %5 : vector<1x128xf32> to vector<8x128xf32>
    %7 = arith.addf %4, %6 : vector<8x128xf32>
    %c0_8 = arith.constant 0 : index
    %c0_9 = arith.constant 0 : index
    %8 = vector.load %arg5[%c0_8, %c0_9] : memref<8x128xf32, #tpu.memory_space<vmem>>, vector<8x128xf32>
    tpu.vector_store %arg5[%c0_8, %c0_9], %7 {strides = array<i32>} : memref<8x128xf32, #tpu.memory_space<vmem>>, vector<8x128xf32>,
    return
  }
  func.func @transform_0(%arg0: i32) -> (i32, i32) {
    %c0_i32 = arith.constant 0 : i32
    %c0_i32_0 = arith.constant 0 : i32
    return %arg0, %c0_i32 : i32, i32
  }
  func.func @transform_1(%arg0: i32) -> (i32, i32) {
    %c0_i32 = arith.constant 0 : i32
    %c0_i32_0 = arith.constant 0 : i32
    %c0_i32_1 = arith.constant 0 : i32
    return %c0_i32, %c0_i32_0 : i32, i32
  }
  func.func @transform_2(%arg0: i32) -> (i32, i32) {
    %c0_i32 = arith.constant 0 : i32
    %c0_i32_0 = arith.constant 0 : i32
    %c0_i32_1 = arith.constant 0 : i32
    return %c0_i32, %c0_i32_0 : i32, i32
  }
  func.func @transform_3(%arg0: i32) -> (i32, i32) {
    %c0_i32 = arith.constant 0 : i32
    %c0_i32_0 = arith.constant 0 : i32
    %c0_i32_1 = arith.constant 0 : i32
    return %c0_i32, %c0_i32_0 : i32, i32
  }
  func.func @transform_4(%arg0: i32) -> (i32, i32) {
    %c0_i32 = arith.constant 0 : i32
    %c0_i32_0 = arith.constant 0 : i32
    return %arg0, %c0_i32 : i32, i32
  }
}

</mosaic_0001>

<bundles_post_ra>
// kernel: tpu_custom_call.1
= control target key start
LH: loop header
LB: loop body
LE: loop exit
PB: predicated region body
PF: predicated region fallthrough
CT: control target
= control target key end

     0   :  { %9 = vsyncpa [#allocation3], 0  ;;  %s617_s0 = inlined_call_operand.hbm [shape: f32[8,128], index: 0, kind: input, shape index: {}]   ;;  %s618_s1 = inlined_call_operand.hbm [shape: f32[128,128], index: 1, kind: input, shape index: {}]   ;;  %s619_s2 = inlined_call_operand.hbm [shape: f32[128,128], index: 2, kind: input, shape index: {}]   ;;  %s620_s3 = inlined_call_operand.vmem [shape: f32[1,128], index: 3, kind: input, shape index: {}]   ;;  %s621_s4 = inlined_call_operand.hbm [shape: f32[8,128], index: 4, kind: output, shape index: {}]  }
   0x1   :  { %10 = vsyncpa [#allocation6], 0 }
   0x2   :  { %11 = vsyncpa [#allocation4], 0  ;;  %s510_s15 = smov [#allocation5]   ;;  %s416_s19 = scalar_lea.hbm %s618_s1, 2048 }
   0x3   :  { %s27_s16 = sshll.u32 %s510_s15, 4  ;;  %p417_p0 = scmp.ne.s32.totalorder %s618_s1, %s416_s19  ;;  %s28_s16 = int_to_ptr.vmem [resolvable:$true] %s27_s16 }
   0x4   :  { %p420_p1 = scmp.lt.u32.totalorder %s416_s19, %s618_s1 }
   0x6   :  { %p422_p2 = pnand %p420_p1, %p417_p0 }
   0x8   :  { %425 = shalt.err (!%p422_p2)
}
   0x9   :  { %s426_s24 = scalar_lea.vmem %s28_s16, 2048  ;;  %p431_p4 = scmp.lt.s32.totalorder %s28_s16, %s28_s16 }
   0xa   :  { %p427_p3 = scmp.ne.s32.totalorder %s28_s16, %s426_s24  ;;  %p432_p5 = scmp.lt.s32.totalorder %s426_s24, %s426_s24 }
   0xc   :  { %p433_p6 = por %p432_p5, %p431_p4 }
   0xe   :  { %p434_p7 = pnand %p433_p6, %p427_p3 }
  0x10   :  { %437 = shalt.err (!%p434_p7)
}
  0x11   :  { %s511_s25 = smov 128   ;;  %s512_s26 = smov 8  }
  0x12   :  { %33 = dma.hbm_to_vmem [thread:$0]  %s618_s1, 2048, %s28_s16, [#allocation6], %s511_s25, %s511_s25, %s512_s26  }
  0x13   :  { %s513_s29 = smov [#allocation2]   ;;  %s514_s5 = smov [#allocation7]  }
  0x14   :  { %s18_s30 = sshll.u32 %s513_s29, 4  ;;  %s39_s6 = sshll.u32 %s514_s5, 4  ;;  %s19_s30 = int_to_ptr.vmem [resolvable:$true] %s18_s30  ;;  %s40_s6 = int_to_ptr.vmem [resolvable:$true] %s39_s6 }
  0x15   :  { %s438_s9 = scalar_lea.hbm %s617_s0, 128 }
  0x16   :  { %p439_p8 = scmp.ne.s32.totalorder %s617_s0, %s438_s9  ;;  %p442_p9 = scmp.lt.u32.totalorder %s438_s9, %s617_s0 }
  0x18   :  { %p444_p10 = pnand %p442_p9, %p439_p8 }
  0x1a   :  { %447 = shalt.err (!%p444_p10)
}
  0x1b   :  { %s448_s1 = scalar_lea.vmem %s19_s30, 128  ;;  %p453_p12 = scmp.lt.s32.totalorder %s19_s30, %s19_s30 }
  0x1c   :  { %p449_p11 = scmp.ne.s32.totalorder %s19_s30, %s448_s1  ;;  %p454_p13 = scmp.lt.s32.totalorder %s448_s1, %s448_s1 }
  0x1e   :  { %p455_p0 = por %p454_p13, %p453_p12 }
  0x20   :  { %p456_p1 = pnand %p455_p0, %p449_p11 }
  0x22   :  { %459 = shalt.err (!%p456_p1)
}
  0x23   :  { %21 = dma.hbm_to_vmem [thread:$0]  %s617_s0, 128, %s19_s30, [#allocation3]  }
  0x24   :  { %s460_s18 = scalar_lea.hbm %s619_s2, 2048 }
  0x25   :  { %p461_p2 = scmp.ne.s32.totalorder %s619_s2, %s460_s18  ;;  %p464_p3 = scmp.lt.u32.totalorder %s460_s18, %s619_s2 }
  0x27   :  { %p466_p4 = pnand %p464_p3, %p461_p2 }
  0x29   :  { %469 = shalt.err (!%p466_p4)
}
  0x2a   :  { %s470_s23 = scalar_lea.vmem %s40_s6, 2048  ;;  %p475_p6 = scmp.lt.s32.totalorder %s40_s6, %s40_s6 }
  0x2b   :  { %p471_p5 = scmp.ne.s32.totalorder %s40_s6, %s470_s23  ;;  %p476_p7 = scmp.lt.s32.totalorder %s470_s23, %s470_s23 }
  0x2d   :  { %p477_p8 = por %p476_p7, %p475_p6 }
  0x2f   :  { %p478_p9 = pnand %p477_p8, %p471_p5 }
  0x31   :  { %481 = shalt.err (!%p478_p9)
}
  0x32   :  { %45 = dma.hbm_to_vmem [thread:$0]  %s619_s2, 2048, %s40_s6, [#allocation6], %s511_s25, %s511_s25, %s512_s26  }
  0x33   :  { %504 = dma.done.wait [#allocation3], 128  }
  0x34   :  { %505 = vsyncadd [#allocation3], 4294967168 }
  0x35   :  { %506 = dma.done.wait [#allocation6], 4096  }
  0x36   :  { %507 = vsyncadd [#allocation6], 4294963200  ;;  %v515_v0 = vmov 0.0|0.0   ;;  %vm516_vm0 = vmmov 0   ;;  %v517_v1 = vmov 0.0   ;;  %v58_v2 = vld [vmem:[#allocation5] sm:$0xff] }
  0x37   :  { %359 = vmatprep.subr.bf16.mxu0 %v515_v0  ;;  %321 = vmatprep.mubr.msk.f32.mxu0 %vm516_vm0, %v517_v1  ;;  %v59_v3 = vld [vmem:[#allocation5 + $0x8] sm:$0xff]  ;;  %v60_v4 = vld [vmem:[#allocation5 + $0x10] sm:$0xff]  ;;  %v61_v6 = vld [vmem:[#allocation5 + $0x18] sm:$0xff]  ;;  %s518_s26 = smov [#allocation8]  }
  0x38   :  { %383 = vmatprep.subr.bf16.mxu1 %v515_v0  ;;  %356 = vmatprep.mubr.msk.f32.mxu1 %vm516_vm0, %v517_v1  ;;  %v360_v5 = vpack.c.bf16 %v59_v3, %v58_v2  ;;  %v363_v7 = vpack.c.bf16 %v61_v6, %v60_v4  ;;  %v62_v8 = vld [vmem:[#allocation5 + $0x20] sm:$0xff]  ;;  %v63_v9 = vld [vmem:[#allocation5 + $0x28] sm:$0xff]  ;;  %v146_v12 = vld [vmem:[#allocation7 + $0x10] sm:$0xff]  ;;  %s244_s27 = sshll.u32 %s518_s26, 4  ;;  %s245_s27 = int_to_ptr.vmem [resolvable:$true] %s244_s27 }
  0x39   :  { %v144_v10 = vld [vmem:[#allocation7] sm:$0xff]  ;;  %v145_v11 = vld [vmem:[#allocation7 + $0x8] sm:$0xff]  ;;  %v147_v13 = vld [vmem:[#allocation7 + $0x18] sm:$0xff]  ;;  %v366_v14 = vpack.c.bf16 %v63_v9, %v62_v8  ;;  %s482_s28 = scalar_lea.vmem %s245_s27, 128  ;;  %p487_p11 = scmp.lt.s32.totalorder %s245_s27, %s245_s27 }
  0x3a   :  { %361 = vmatpush3.bf16.msra.mxu0 %v360_v5  ;;  %v384_v15 = vpack.c.bf16 %v145_v11, %v144_v10  ;;  %v64_v16 = vld [vmem:[#allocation5 + $0x30] sm:$0xff]  ;;  %v65_v17 = vld [vmem:[#allocation5 + $0x38] sm:$0xff]  ;;  %v387_v18 = vpack.c.bf16 %v147_v13, %v146_v12  ;;  %v148_v19 = vld [vmem:[#allocation7 + $0x20] sm:$0xff]  ;;  %p483_p10 = scmp.ne.s32.totalorder %s245_s27, %s482_s28  ;;  %p488_p12 = scmp.lt.s32.totalorder %s482_s28, %s482_s28 }
  0x3b   :  { %362 = vmatprep.subr.bf16.mxu0 %v515_v0  ;;  %v149_v20 = vld [vmem:[#allocation7 + $0x28] sm:$0xff]  ;;  %v369_v21 = vpack.c.bf16 %v65_v17, %v64_v16  ;;  %v66_v22 = vld [vmem:[#allocation5 + $0x40] sm:$0xff]  ;;  %v150_v25 = vld [vmem:[#allocation7 + $0x30] sm:$0xff] }
  0x3c   :  { %385 = vmatpush3.bf16.msra.mxu1 %v384_v15  ;;  %v67_v23 = vld [vmem:[#allocation5 + $0x48] sm:$0xff]  ;;  %v390_v24 = vpack.c.bf16 %v149_v20, %v148_v19  ;;  %v151_v26 = vld [vmem:[#allocation7 + $0x38] sm:$0xff]  ;;  %v68_v28 = vld [vmem:[#allocation5 + $0x50] sm:$0xff]  ;;  %p489_p13 = por %p488_p12, %p487_p11 }
  0x3d   :  { %386 = vmatprep.subr.bf16.mxu1 %v515_v0  ;;  %v372_v27 = vpack.c.bf16 %v67_v23, %v66_v22  ;;  %v69_v29 = vld [vmem:[#allocation5 + $0x58] sm:$0xff]  ;;  %v393_v30 = vpack.c.bf16 %v151_v26, %v150_v25  ;;  %v152_v31 = vld [vmem:[#allocation7 + $0x40] sm:$0xff]  ;;  %v153_v32 = vld [vmem:[#allocation7 + $0x48] sm:$0xff] }
  0x3e   :  { %364 = vmatpush3.bf16.msra.mxu0 %v363_v7  ;;  %v375_v33 = vpack.c.bf16 %v69_v29, %v68_v28  ;;  %v70_v34 = vld [vmem:[#allocation5 + $0x60] sm:$0xff]  ;;  %v71_v35 = vld [vmem:[#allocation5 + $0x68] sm:$0xff]  ;;  %v396_v36 = vpack.c.bf16 %v153_v32, %v152_v31  ;;  %v154_v37 = vld [vmem:[#allocation7 + $0x50] sm:$0xff]  ;;  %p490_p0 = pnand %p489_p13, %p483_p10 }
  0x3f   :  { %365 = vmatprep.subr.bf16.mxu0 %v515_v0  ;;  %v155_v38 = vld [vmem:[#allocation7 + $0x58] sm:$0xff]  ;;  %v378_v39 = vpack.c.bf16 %v71_v35, %v70_v34  ;;  %v72_v40 = vld [vmem:[#allocation5 + $0x70] sm:$0xff]  ;;  %v156_v43 = vld [vmem:[#allocation7 + $0x60] sm:$0xff] }
  0x40   :  { %388 = vmatpush3.bf16.msra.mxu1 %v387_v18  ;;  %v73_v41 = vld [vmem:[#allocation5 + $0x78] sm:$0xff]  ;;  %v399_v42 = vpack.c.bf16 %v155_v38, %v154_v37  ;;  %v157_v44 = vld [vmem:[#allocation7 + $0x68] sm:$0xff]  ;;  %v158_v47 = vld [vmem:[#allocation7 + $0x70] sm:$0xff] }
  0x41   :  { %389 = vmatprep.subr.bf16.mxu1 %v515_v0  ;;  %v381_v45 = vpack.c.bf16 %v73_v41, %v72_v40  ;;  %v402_v46 = vpack.c.bf16 %v157_v44, %v156_v43  ;;  %v159_v48 = vld [vmem:[#allocation7 + $0x78] sm:$0xff] }
  0x42   :  { %367 = vmatpush3.bf16.msra.mxu0 %v366_v14  ;;  %v57_v49 = vld [vmem:[#allocation2] sm:$0xff]  ;;  %v405_v50 = vpack.c.bf16 %v159_v48, %v158_v47 }
  0x43   :  { %368 = vmatprep.subr.bf16.mxu0 %v515_v0  ;;  %v254_v53 = vld [vmem:[%s620_s3] ss:$0 sm:$0xff] }
  0x44   :  { %391 = vmatpush3.bf16.msra.mxu1 %v390_v24 }
  0x45   :  { %392 = vmatprep.subr.bf16.mxu1 %v515_v0 }
  0x46   :  { %370 = vmatpush3.bf16.msra.mxu0 %v369_v21 }
  0x47   :  { %371 = vmatprep.subr.bf16.mxu0 %v515_v0 }
  0x48   :  { %394 = vmatpush3.bf16.msra.mxu1 %v393_v30 }
  0x49   :  { %395 = vmatprep.subr.bf16.mxu1 %v515_v0 }
  0x4a   :  { %373 = vmatpush3.bf16.msra.mxu0 %v372_v27 }
  0x4b   :  { %374 = vmatprep.subr.bf16.mxu0 %v515_v0 }
  0x4c   :  { %397 = vmatpush3.bf16.msra.mxu1 %v396_v36 }
  0x4d   :  { %398 = vmatprep.subr.bf16.mxu1 %v515_v0 }
  0x4e   :  { %376 = vmatpush3.bf16.msra.mxu0 %v375_v33 }
  0x4f   :  { %377 = vmatprep.subr.bf16.mxu0 %v515_v0 }
  0x50   :  { %400 = vmatpush3.bf16.msra.mxu1 %v399_v42 }
  0x51   :  { %401 = vmatprep.subr.bf16.mxu1 %v515_v0 }
  0x52   :  { %379 = vmatpush3.bf16.msra.mxu0 %v378_v39 }
  0x53   :  { %380 = vmatprep.subr.bf16.mxu0 %v515_v0 }
  0x54   :  { %403 = vmatpush3.bf16.msra.mxu1 %v402_v46 }
  0x55   :  { %404 = vmatprep.subr.bf16.mxu1 %v515_v0 }
  0x56   :  { %382 = vmatpush3.bf16.msra.mxu0 %v381_v45 }
  0x58   :  { %406 = vmatpush3.bf16.msra.mxu1 %v405_v50 }
  0x59   :  { %322 = vmatmul.mubr.f32.vlgmr.msra.gmra.mrb[0].mxu0 %v57_v49 }
 0x12c   :  { %v140_v51 = vpop.f32.mrb[0].mxu0 }
 0x12d   :  { %v323_v52 = vpop.f32.mrb[1].mxu0  ;;  %357 = vmatmul.mubr.f32.vlgmr.msra.gmra.mrb[0].mxu1 %v140_v51 }
 0x200   :  { %v233_v54 = vpop.f32.mrb[0].mxu1 }
 0x201   :  { %v234_v55 = vadd.f32 %v254_v53, %v233_v54  ;;  %v358_v56 = vpop.f32.mrb[1].mxu1 }
 0x203   :  { %237 = vst [vmem:[#allocation8] sm:$0xff] %v234_v55 }
 0x204   :  { %493 = shalt.err (!%p490_p0)
}
 0x205   :  { %s494_s5 = scalar_lea.hbm %s621_s4, 128 }
 0x206   :  { %p495_p1 = scmp.ne.s32.totalorder %s621_s4, %s494_s5  ;;  %p498_p2 = scmp.lt.u32.totalorder %s494_s5, %s621_s4 }
 0x208   :  { %p500_p3 = pnand %p498_p2, %p495_p1 }
 0x20a   :  { %503 = shalt.err (!%p500_p3)
}
 0x20b   :  { %247 = dma.vmem_to_hbm [thread:$0]  %s245_s27, 128, %s621_s4, [#allocation4]  }
 0x20c   :  { %508 = dma.done.wait [#allocation4], 128  }
 0x20d   :  { %509 = vsyncadd [#allocation4], 4294967168 }
 0x20e   :  { %251 = vsyncpa [#allocation3], 1 }
 0x20f   :  { %252 = vsyncpa [#allocation6], 1 }
 0x210   :  { %253 = vsyncpa [#allocation4], 1 }

</bundles_post_ra>
